<compile_context>
chip_gen: v7x
topology: tpu7x:2x2x1
jax: 0.10.0
libtpu: 0.0.40
codegen_flags: <defaults>
</compile_context>

<pallas_src>
import jax
import jax.numpy as jnp
from jax.experimental import pallas as pl
from jax.experimental.pallas import tpu as pltpu


def _folded_affine_kernel(x_ref, w_ref, b_ref, o_ref):
    # x_ref: (TILE_B, in_dim) f32 VMEM -- streamed batch tile, natural layout
    # w_ref: (1, in_dim)      f32 VMEM -- folded weight row (grid-invariant)
    # b_ref: (1,)             f32 SMEM -- folded bias scalar
    # o_ref: (TILE_B, 1)      f32 VMEM -- per-row result column
    x = x_ref[...]
    w = w_ref[...]                                # broadcasts over the batch (sublane) axis
    # VPU multiply + cross-lane reduce over in_dim.  Rows never mix, so the
    # masked partial last tile stays correct without any wrapper-side padding.
    y = jnp.sum(x * w, axis=1, keepdims=True)     # (TILE_B, 1)
    o_ref[...] = y + b_ref[0]


def _derive_tile_b(batch, in_dim):
    """Pick a batch-tile size (rows) from the feature width and batch size.

    Accounts for VMEM lane padding: a (tb, in_dim) f32 buffer occupies
    tb * ceil(in_dim/128)*128*4 bytes, and the (tb, 1) output buffer occupies
    tb * 512 bytes.  Both are double-buffered by the pipeline.
    """
    lane = 128
    x_row_vmem = pl.cdiv(in_dim, lane) * lane * 4      # x row, lane-padded
    o_row_vmem = lane * 4                               # (tb,1) out row, lane-padded
    per_row = 2 * x_row_vmem + 2 * o_row_vmem           # double-buffered x + out

    budget = 24 * 1024 * 1024                           # leave headroom under the 32 MiB limit
    tb = budget // per_row

    # v7x has 2 TensorCores: once the input is big enough to be worth splitting,
    # cap the tile at ~half the batch so the "parallel" grid has >= 2 steps.
    if batch * in_dim * 4 >= (2 << 20):
        half_rows = pl.cdiv(pl.cdiv(batch, 2), lane) * lane
        tb = min(tb, half_rows)

    tb = max(lane, (tb // lane) * lane)                  # multiple of 128 rows
    return tb


def linear_regression_forward(x, w1, b1, w2, b2, w3, b3, *, tile_b=None):
    """y = ((x @ w1 + b1) @ w2 + b2) @ w3 + b3  (same forward as the PyTorch module)."""
    B, in_dim = x.shape
    dt = jnp.float32

    # Fold the activation-free 3-layer stack into one affine map (trace-time XLA ops).
    w_eff = (w1 @ w2 @ w3).astype(dt)                               # (in_dim, 1)
    w_row = w_eff.reshape(1, in_dim)                                # weight row for broadcast
    b_eff = ((b1 @ w2 + b2) @ w3 + b3).astype(dt).reshape((1,))     # scalar

    x = x.astype(dt)            # natural (B, in_dim) layout: no transpose, no pad

    tb = tile_b if tile_b is not None else _derive_tile_b(B, in_dim)
    if B <= tb:
        tb = B                  # single full-extent tile (block dims == array dims)
    else:
        assert tb % 128 == 0, "tile_b must be a multiple of 128 rows"
    grid = (pl.cdiv(B, tb),)    # ragged last tile is masked by Pallas (no jnp.pad)

    out = pl.pallas_call(
        _folded_affine_kernel,
        out_shape=jax.ShapeDtypeStruct((B, 1), dt),
        grid_spec=pltpu.PrefetchScalarGridSpec(
            num_scalar_prefetch=0,
            grid=grid,
            in_specs=[
                # Streamed x tiles: contiguous HBM slabs (in_dim is the full last dim).
                pl.BlockSpec((tb, in_dim), lambda i: (i, 0)),
                # Folded weight row: grid-invariant, stays VMEM-resident
                # (its redundant second pipeline buffer is only in_dim*4 bytes).
                pl.BlockSpec((1, in_dim), lambda i: (0, 0)),
                # Folded bias scalar in SMEM.
                pl.BlockSpec(memory_space=pltpu.MemorySpace.SMEM),
            ],
            out_specs=pl.BlockSpec((tb, 1), lambda i: (i, 0)),
        ),
        compiler_params=pltpu.CompilerParams(
            # Independent batch tiles: megacore-shard across v7x's 2 TCs; neutral on v5e/v6e.
            dimension_semantics=("parallel",),
            # Headroom above v5e's 16 MiB default scoped limit; equals v7x's default (64 MiB physical).
            vmem_limit_bytes=32 * 1024 * 1024,
        ),
    )(x, w_row, b_eff)

    return out                  # already in the PyTorch (B, 1) layout


def init_params(key, in_dim, hidden_dim1, hidden_dim2):
    """Deterministic init mirroring nn.Linear's U(-1/sqrt(fan_in), 1/sqrt(fan_in)).
    Weights are stored as (fan_in, fan_out), i.e. transposed vs PyTorch."""
    ks = jax.random.split(key, 6)

    def layer(kw, kb, fan_in, fan_out):
        bound = 1.0 / jnp.sqrt(fan_in)
        w = jax.random.uniform(kw, (fan_in, fan_out), jnp.float32, -bound, bound)
        b = jax.random.uniform(kb, (1, fan_out), jnp.float32, -bound, bound)
        return w, b

    w1, b1 = layer(ks[0], ks[1], in_dim, hidden_dim1)
    w2, b2 = layer(ks[2], ks[3], hidden_dim1, hidden_dim2)
    w3, b3 = layer(ks[4], ks[5], hidden_dim2, 1)
    return w1, b1, w2, b2, w3, b3


if __name__ == "__main__":
    in_dim, hidden_dim1, hidden_dim2 = 16, 32, 24

    key = jax.random.PRNGKey(0)
    kx, kp = jax.random.split(key)
    params = init_params(kp, in_dim, hidden_dim1, hidden_dim2)
    w1, b1, w2, b2, w3, b3 = params

    # Three configurations:
    #   batch=8    -> tiny single full-extent tile
    #   batch=300  -> forced tile_b=128: multi-tile "parallel" grid with a masked
    #                 ragged last tile (exercises the no-pad path)
    #   batch=1024 -> auto-derived tile size
    for batch, tile_b in ((8, None), (300, 128), (1024, None)):
        x = jax.random.normal(jax.random.fold_in(kx, batch), (batch, in_dim), jnp.float32)
        out = linear_regression_forward(x, *params, tile_b=tile_b)
        out = jax.block_until_ready(out)

        # Pure-JAX reference of the original (un-folded) 3-layer forward.
        ref = ((x @ w1 + b1) @ w2 + b2) @ w3 + b3
        assert out.shape == (batch, 1), out.shape
        assert jnp.allclose(out, ref, atol=1e-4, rtol=1e-4), (
            f"mismatch at batch={batch}: max abs err "
            f"{float(jnp.max(jnp.abs(out - ref)))}")

    print("KERNEL_OK")
</pallas_src>

<mosaic_0001>
module attributes {stable_mosaic.version = 11 : i64} {
  func.func @_folded_affine_kernel(%arg0: i32, %arg1: memref<8x16xf32, #tpu.memory_space<vmem>>, %arg2: memref<1x16xf32, #tpu.memory_space<vmem>>, %arg3: memref<1xf32, #tpu.memory_space<smem>>, %arg4: memref<8x1xf32, #tpu.memory_space<vmem>>) attributes {dimension_semantics = [#tpu.dimension_semantics<parallel>], iteration_bounds = array<i64: 1>, scalar_prefetch = 0 : i64, scratch_operands = 0 : i64, tpu.core_type = #tpu.core_type<tc>, window_params = [{transform_indices = @transform_0, window_bounds = array<i64: 8, 16>}, {pipeline_mode = #tpu.pipeline_mode<synchronous>, transform_indices = @transform_1, window_bounds = array<i64: 1, 16>}, {transform_indices = @transform_2, window_bounds = array<i64: 1>}, {transform_indices = @transform_3, window_bounds = array<i64: 8, 1>}]} {
    %c0 = arith.constant 0 : index
    %c0_0 = arith.constant 0 : index
    %0 = vector.load %arg1[%c0, %c0_0] : memref<8x16xf32, #tpu.memory_space<vmem>>, vector<8x16xf32>
    %c0_1 = arith.constant 0 : index
    %c0_2 = arith.constant 0 : index
    %1 = vector.load %arg2[%c0_1, %c0_2] : memref<1x16xf32, #tpu.memory_space<vmem>>, vector<1x16xf32>
    %2 = vector.broadcast %1 : vector<1x16xf32> to vector<8x16xf32>
    %3 = arith.mulf %0, %2 : vector<8x16xf32>
    %cst = arith.constant dense<0.000000e+00> : vector<8xf32>
    %4 = vector.multi_reduction <add>, %3, %cst [1] : vector<8x16xf32> to vector<8xf32>
    %5 = vector.shape_cast %4 : vector<8xf32> to vector<8x1xf32>
    %c0_3 = arith.constant 0 : index
    %6 = memref.load %arg3[%c0_3] : memref<1xf32, #tpu.memory_space<smem>>
    %7 = vector.broadcast %6 : f32 to vector<8x1xf32>
    %8 = arith.addf %5, %7 : vector<8x1xf32>
    %c0_4 = arith.constant 0 : index
    %c0_5 = arith.constant 0 : index
    %9 = vector.load %arg4[%c0_4, %c0_5] : memref<8x1xf32, #tpu.memory_space<vmem>>, vector<8x1xf32>
    tpu.vector_store %arg4[%c0_4, %c0_5], %8 {strides = array<i32>} : memref<8x1xf32, #tpu.memory_space<vmem>>, vector<8x1xf32>,
    return
  }
  func.func @transform_0(%arg0: i32) -> (i32, i32) {
    %c0_i32 = arith.constant 0 : i32
    %c0_i32_0 = arith.constant 0 : i32
    return %arg0, %c0_i32 : i32, i32
  }
  func.func @transform_1(%arg0: i32) -> (i32, i32) {
    %c0_i32 = arith.constant 0 : i32
    %c0_i32_0 = arith.constant 0 : i32
    %c0_i32_1 = arith.constant 0 : i32
    return %c0_i32, %c0_i32_0 : i32, i32
  }
  func.func @transform_2(%arg0: i32) -> i32 {
    %c0_i32 = arith.constant 0 : i32
    %c0_i32_0 = arith.constant 0 : i32
    return %c0_i32 : i32
  }
  func.func @transform_3(%arg0: i32) -> (i32, i32) {
    %c0_i32 = arith.constant 0 : i32
    %c0_i32_0 = arith.constant 0 : i32
    return %arg0, %c0_i32 : i32, i32
  }
}

</mosaic_0001>

<bundles_post_ra>
// kernel: tpu_custom_call.1
= control target key start
LH: loop header
LB: loop body
LE: loop exit
PB: predicated region body
PF: predicated region fallthrough
CT: control target
= control target key end

     0   :  { %9 = vsyncpa [#allocation4], 0  ;;  %s76_s12 = smov [#allocation3]   ;;  %s118_s0 = inlined_call_operand.hbm [shape: f32[8,16], index: 0, kind: input, shape index: {}]   ;;  %s119_s1 = inlined_call_operand.vmem [shape: f32[1,16], index: 1, kind: input, shape index: {}]   ;;  %s120_s2 = inlined_call_operand.<no memory space> [shape: f32[1], index: 2, kind: input, shape index: {}]   ;;  %s121_s3 = inlined_call_operand.vmem [shape: f32[8,1], index: 3, kind: output, shape index: {}]  }
   0x1   :  { %s16_s13 = sshll.u32 %s76_s12, 4  ;;  %s52_s16 = scalar_lea.hbm %s118_s0, 128  ;;  %s17_s13 = int_to_ptr.vmem [resolvable:$true] %s16_s13 }
   0x2   :  { %p53_p0 = scmp.ne.s32.totalorder %s118_s0, %s52_s16  ;;  %p56_p1 = scmp.lt.u32.totalorder %s52_s16, %s118_s0 }
   0x4   :  { %p58_p2 = pnand %p56_p1, %p53_p0 }
   0x6   :  { %61 = shalt.err (!%p58_p2)
}
   0x7   :  { %s62_s21 = scalar_lea.vmem %s17_s13, 128  ;;  %p67_p4 = scmp.lt.s32.totalorder %s17_s13, %s17_s13 }
   0x8   :  { %p63_p3 = scmp.ne.s32.totalorder %s17_s13, %s62_s21  ;;  %p68_p5 = scmp.lt.s32.totalorder %s62_s21, %s62_s21 }
   0xa   :  { %p69_p6 = por %p68_p5, %p67_p4 }
   0xc   :  { %p70_p7 = pnand %p69_p6, %p63_p3 }
   0xe   :  { %73 = shalt.err (!%p70_p7)
}
   0xf   :  { %19 = dma.hbm_to_vmem [thread:$0]  %s118_s0, 128, %s17_s13, [#allocation4]  }
  0x10   :  { %74 = dma.done.wait [#allocation4], 128  }
  0x11   :  { %75 = vsyncadd [#allocation4], 4294967168  ;;  %v27_v0 = vld [vmem:[#allocation3] sm:$0xff]  ;;  %vm36_vm0 = vcmask 130048   ;;  %v41_v4 = vstv %s120_s2  ;;  %vm43_vm1 = vcmask 7168  }
  0x12   :  { %v50_v1 = vld [vmem:[%s119_s1] ss:$0 sm:$0xff] }
  0x13   :  { %v35_v2 = vmul.f32 %v50_v1, %v27_v0 }
  0x15   :  { %v37_v3 = vsel %vm36_vm0, %v35_v2, 0.0 }
  0x16   :  { %38 = vadd.xlane.f32.xlu0 %v37_v3 }
  0xa3   :  { %v39_v5 = vpop.xlane.xlu0 %38 }
  0xa4   :  { %v42_v6 = vadd.f32 %v41_v4, %v39_v5 }
  0xa6   :  { %44 = vst.msk [vmem:[%s121_s3] sm:$0xff] %vm43_vm1, %v42_v6 }
  0xa7   :  { %49 = vsyncpa [#allocation4], 1 }

</bundles_post_ra>
